<compile_context>
chip_gen: v7x
topology: tpu7x:2x2x1
jax: 0.10.0
libtpu: 0.0.40
codegen_flags: <defaults>
</compile_context>

<pallas_src>
import math

import jax
import jax.numpy as jnp
from jax.experimental import pallas as pl
from jax.experimental.pallas import tpu as pltpu


def _cdiv(a, b):
    return -(-a // b)


def _round_up(a, m):
    return _cdiv(a, m) * m


def _vmem_capacity_bytes():
    """Physical per-core VMEM; conservative 64 MiB (v7x) if the query fails."""
    try:
        return int(pltpu.get_tpu_info().vmem_capacity_bytes)
    except Exception:  # pragma: no cover - older runtimes / CPU tracing
        return 64 * 1024 * 1024


def mlp_kernel(x_ref, w1_ref, b1_ref, w2_ref, b2_ref, o_ref):
    """relu(x @ w1 + b1) @ w2 + b2 for one (row-packed) batch tile.

    x_ref : (tb, r*F)   VMEM tile; each row packs r logical batch rows
    w1_ref: (r*F, 2*r)  VMEM, grid-resident block-diagonal layer-1 weight
                        (columns [unit0 for j=0..r-1 | unit1 for j=0..r-1])
    b1_ref: (2,)        SMEM f32 scalars
    w2_ref: (2,)        SMEM f32 scalars (layer-2 weight column, flattened)
    b2_ref: (1,)        SMEM f32 scalar
    o_ref : (1, r, tb)  lane-dense output; [0, j, t] is the prediction for
                        logical batch row (tile_base + t) * r + j
    """
    r = o_ref.shape[1]
    # Layer 1 on the MXU (K = r*F contraction); always accumulate in f32.
    h = jnp.dot(x_ref[...], w1_ref[...],
                preferred_element_type=jnp.float32)          # (tb, 2r)
    # One cheap XLU transpose so ReLU / layer-2 / the store all run on
    # lane-dense rows instead of a few-lane-wide columns.
    ht = h.T                                                 # (2r, tb)
    h0 = jnp.maximum(ht[:r, :] + b1_ref[0], 0.0)             # (r, tb)
    h1 = jnp.maximum(ht[r:, :] + b1_ref[1], 0.0)             # (r, tb)
    # Layer 2 (2 -> 1) on the VPU: an MXU matmul here would be a waste.
    y = h0 * w2_ref[0] + h1 * w2_ref[1] + b2_ref[0]          # (r, tb)
    o_ref[...] = y.reshape(o_ref.shape).astype(o_ref.dtype)


def _pick_tb(b_packed, row_bytes, x_db_budget):
    """Byte-targeted packed-batch tile: ~half the x double-buffer budget per
    tile, 128-aligned, and >= 4 grid steps when the batch allows it."""
    tb = max(128, ((x_db_budget // 2) // max(row_bytes, 1)) // 128 * 128)
    tb = max(128, min(tb, _round_up(b_packed, 128)))
    while tb > 128 and _cdiv(b_packed, tb) < 4:
        tb = max(128, (tb // 2) // 128 * 128)
    return tb


def mlp_forward(x, w1, b1, w2, b2, *, tb=None):
    """Pallas forward of MLP: Linear(F->2) -> ReLU -> Linear(2->1).

    Weights are stored pre-transposed vs PyTorch:
      w1 = hidden.weight.T (F, 2), b1 = hidden.bias (2,)
      w2 = output.weight[0] (2,),  b2 = output.bias (1,)
    """
    B, F = x.shape
    itemsize = jnp.dtype(x.dtype).itemsize

    # ---- Small-F row packing: pack r logical rows per lane row so DMA rows
    # are lane-dense and the MXU runs at N = 2r instead of N = 2.
    r = max(1, min(64, 128 // F))
    Fp = r * F
    f_lanes = _round_up(Fp, 128)           # x tile rows are lane-padded in VMEM
    row_bytes = f_lanes * itemsize

    # ---- Generation-aware VMEM budgets.
    vmem_cap = _vmem_capacity_bytes()
    two_tc = vmem_cap < 96 * 1024 * 1024            # v7x: 64 MiB/TC, 2 TCs
    x_db_budget = (22 if two_tc else 48) * 1024 * 1024  # x double-buffer budget

    b_packed = _cdiv(B, r)
    if tb is None:
        tb = _pick_tb(b_packed, row_bytes, x_db_budget)
    else:
        tb = max(16, _round_up(tb, 16))
    # Huge-F fallback: shrink (keeping 16-row alignment so bf16 packed rows
    # stay legal) until the double-buffered x tile fits the budget.
    while tb > 16 and 2 * tb * row_bytes > x_db_budget:
        tb = max(16, _round_up(tb // 2, 16))

    grid_b = _cdiv(b_packed, tb)
    if two_tc and grid_b > 1 and grid_b % 2 == 1:
        grid_b += 1                         # even tile split over v7x's two TCs
    b_pad = grid_b * tb * r
    if b_pad != B:                          # ragged batch: pad, slice afterwards
        x = jnp.pad(x, ((0, b_pad - B), (0, 0)))
    xp = x.reshape(grid_b * tb, Fp)         # packed rows

    # ---- Packed layer-1 weight (block diagonal); tiny params to SMEM f32.
    w1 = jnp.asarray(w1, x.dtype).reshape(F, 2)
    eye_r = jnp.eye(r, dtype=x.dtype)                                    # (r, r)
    w1p = jnp.concatenate(
        [(w1[:, 0][None, :, None] * eye_r[:, None, :]).reshape(Fp, r),
         (w1[:, 1][None, :, None] * eye_r[:, None, :]).reshape(Fp, r)],
        axis=1)                                                          # (Fp, 2r)
    b1 = jnp.asarray(b1, jnp.float32).reshape(2)
    w2 = jnp.asarray(w2, jnp.float32).reshape(2)
    b2 = jnp.asarray(b2, jnp.float32).reshape(1)

    # ---- VMEM limit: actual need + slack, floored at 32 MiB (v5e near-
    # threshold safety), capped at ~78% of physical VMEM (headroom for Mosaic
    # internal scratch — never request all 64 MiB on v7x).
    est_vmem = (2 * tb * row_bytes                                      # x, 2-buf
                + 2 * _round_up(r, 16) * _round_up(tb, 128) * itemsize  # out, 2-buf
                + 2 * _round_up(Fp, 16) * 128 * itemsize                # w1 (resident)
                + (1 << 20))                                            # slack
    vmem_limit = int(min(max(est_vmem, 32 * 1024 * 1024),
                         int(0.78 * vmem_cap)))

    cost = pl.CostEstimate(
        flops=4 * b_pad * F + 6 * b_pad,
        transcendentals=0,
        bytes_accessed=int(xp.size * itemsize + w1p.size * itemsize
                           + grid_b * r * tb * itemsize),
    )

    out = pl.pallas_call(
        mlp_kernel,
        out_shape=jax.ShapeDtypeStruct((grid_b, r, tb), x.dtype),
        grid=(grid_b,),
        in_specs=[
            pl.BlockSpec((tb, Fp), lambda i: (i, 0)),             # x batch tile
            pl.BlockSpec((Fp, 2 * r), lambda i: (0, 0)),          # w1, resident
            pl.BlockSpec(memory_space=pltpu.MemorySpace.SMEM),    # b1
            pl.BlockSpec(memory_space=pltpu.MemorySpace.SMEM),    # w2
            pl.BlockSpec(memory_space=pltpu.MemorySpace.SMEM),    # b2
        ],
        out_specs=pl.BlockSpec((1, r, tb), lambda i: (i, 0, 0)),
        compiler_params=pltpu.CompilerParams(
            dimension_semantics=("parallel",),
            vmem_limit_bytes=vmem_limit,
        ),
        cost_estimate=cost,
    )(xp, w1p, b1, w2, b2)

    # out[g, j, t] is the prediction for logical batch row (g*tb + t)*r + j.
    return out.transpose(0, 2, 1).reshape(b_pad, 1)[:B]


def init_params(key, n_feature):
    # torch.nn.Linear default init: U(-1/sqrt(fan_in), 1/sqrt(fan_in)).
    k1, k2, k3, k4 = jax.random.split(key, 4)
    bound1 = 1.0 / math.sqrt(n_feature)
    w1 = jax.random.uniform(k1, (n_feature, 2), jnp.float32, -bound1, bound1)
    b1 = jax.random.uniform(k2, (2,), jnp.float32, -bound1, bound1)
    bound2 = 1.0 / math.sqrt(2)
    w2 = jax.random.uniform(k3, (2,), jnp.float32, -bound2, bound2)
    b2 = jax.random.uniform(k4, (1,), jnp.float32, -bound2, bound2)
    return w1, b1, w2, b2


def _ref_forward(x, w1, b1, w2, b2):
    # Pure-JAX reference of the PyTorch forward semantics.
    return jnp.maximum(x @ w1 + b1[None, :], 0.0) @ w2[:, None] + b2[None, :]


if __name__ == "__main__":
    key = jax.random.PRNGKey(0)
    kx1, kx2, kp1, kp2 = jax.random.split(key, 4)

    # Small-F path (row packing, r = 4).
    B, F = 16, 32
    x = jax.random.normal(kx1, (B, F), jnp.float32)
    w1, b1, w2, b2 = init_params(kp1, F)
    out = jax.block_until_ready(mlp_forward(x, w1, b1, w2, b2))
    ref = _ref_forward(x, w1, b1, w2, b2)
    assert out.shape == (B, 1)
    assert jnp.allclose(out, ref, atol=1e-5, rtol=1e-5), float(
        jnp.abs(out - ref).max())

    # Wide-F / ragged-batch path (r = 1, grid_b > 1).
    B2, F2 = 200, 160
    x2 = jax.random.normal(kx2, (B2, F2), jnp.float32)
    w1b, b1b, w2b, b2b = init_params(kp2, F2)
    out2 = jax.block_until_ready(mlp_forward(x2, w1b, b1b, w2b, b2b))
    ref2 = _ref_forward(x2, w1b, b1b, w2b, b2b)
    assert out2.shape == (B2, 1)
    assert jnp.allclose(out2, ref2, atol=1e-4, rtol=1e-4), float(
        jnp.abs(out2 - ref2).max())

    print("KERNEL_OK")
</pallas_src>

<mosaic_0001>
module attributes {stable_mosaic.version = 11 : i64} {
  func.func @mlp_kernel(%arg0: i32, %arg1: memref<128x128xf32, #tpu.memory_space<vmem>>, %arg2: memref<128x8xf32, #tpu.memory_space<vmem>>, %arg3: memref<2xf32, #tpu.memory_space<smem>>, %arg4: memref<2xf32, #tpu.memory_space<smem>>, %arg5: memref<1xf32, #tpu.memory_space<smem>>, %arg6: memref<1x4x128xf32, #tpu.memory_space<vmem>>) attributes {dimension_semantics = [#tpu.dimension_semantics<parallel>], iteration_bounds = array<i64: 1>, scalar_prefetch = 0 : i64, scratch_operands = 0 : i64, tpu.core_type = #tpu.core_type<tc>, window_params = [{transform_indices = @transform_0, window_bounds = array<i64: 128, 128>}, {pipeline_mode = #tpu.pipeline_mode<synchronous>, transform_indices = @transform_1, window_bounds = array<i64: 128, 8>}, {transform_indices = @transform_2, window_bounds = array<i64: 2>}, {transform_indices = @transform_3, window_bounds = array<i64: 2>}, {transform_indices = @transform_4, window_bounds = array<i64: 1>}, {transform_indices = @transform_5, window_bounds = array<i64: 1, 4, 128>}]} {
    %c0 = arith.constant 0 : index
    %c0_0 = arith.constant 0 : index
    %0 = vector.load %arg1[%c0, %c0_0] : memref<128x128xf32, #tpu.memory_space<vmem>>, vector<128x128xf32>
    %c0_1 = arith.constant 0 : index
    %c0_2 = arith.constant 0 : index
    %1 = vector.load %arg2[%c0_1, %c0_2] : memref<128x8xf32, #tpu.memory_space<vmem>>, vector<128x8xf32>
    %cst = arith.constant dense<0.000000e+00> : vector<128x8xf32>
    %2 = tpu.matmul %0, %1, %cst {dimension_numbers = #tpu.dot_dimension_numbers<[1], [0], [0], [1], [0, 0, 1, 1], [], []>} : vector<128x128xf32>, vector<128x8xf32>, vector<128x8xf32> -> vector<128x8xf32>
    %3 = tpu.transpose %2, [1, 0] : vector<128x8xf32> -> vector<8x128xf32>
    %4 = vector.extract_strided_slice %3 {offsets = [0, 0], sizes = [4, 128], strides = [1, 1]} : vector<8x128xf32> to vector<4x128xf32>
    %c0_3 = arith.constant 0 : index
    %5 = memref.load %arg3[%c0_3] : memref<2xf32, #tpu.memory_space<smem>>
    %6 = vector.broadcast %5 : f32 to vector<4x128xf32>
    %7 = arith.addf %4, %6 : vector<4x128xf32>
    %cst_4 = arith.constant 0.000000e+00 : f32
    %8 = vector.broadcast %cst_4 : f32 to vector<4x128xf32>
    %9 = arith.maximumf %7, %8 : vector<4x128xf32>
    %10 = vector.extract_strided_slice %3 {offsets = [4, 0], sizes = [4, 128], strides = [1, 1]} : vector<8x128xf32> to vector<4x128xf32>
    %c1 = arith.constant 1 : index
    %11 = memref.load %arg3[%c1] : memref<2xf32, #tpu.memory_space<smem>>
    %12 = vector.broadcast %11 : f32 to vector<4x128xf32>
    %13 = arith.addf %10, %12 : vector<4x128xf32>
    %cst_5 = arith.constant 0.000000e+00 : f32
    %14 = vector.broadcast %cst_5 : f32 to vector<4x128xf32>
    %15 = arith.maximumf %13, %14 : vector<4x128xf32>
    %c0_6 = arith.constant 0 : index
    %16 = memref.load %arg4[%c0_6] : memref<2xf32, #tpu.memory_space<smem>>
    %17 = vector.broadcast %16 : f32 to vector<4x128xf32>
    %18 = arith.mulf %9, %17 : vector<4x128xf32>
    %c1_7 = arith.constant 1 : index
    %19 = memref.load %arg4[%c1_7] : memref<2xf32, #tpu.memory_space<smem>>
    %20 = vector.broadcast %19 : f32 to vector<4x128xf32>
    %21 = arith.mulf %15, %20 : vector<4x128xf32>
    %22 = arith.addf %18, %21 : vector<4x128xf32>
    %c0_8 = arith.constant 0 : index
    %23 = memref.load %arg5[%c0_8] : memref<1xf32, #tpu.memory_space<smem>>
    %24 = vector.broadcast %23 : f32 to vector<4x128xf32>
    %25 = arith.addf %22, %24 : vector<4x128xf32>
    %26 = vector.shape_cast %25 : vector<4x128xf32> to vector<1x4x128xf32>
    %c0_9 = arith.constant 0 : index
    %c0_10 = arith.constant 0 : index
    %c0_11 = arith.constant 0 : index
    %27 = vector.load %arg6[%c0_9, %c0_10, %c0_11] : memref<1x4x128xf32, #tpu.memory_space<vmem>>, vector<1x4x128xf32>
    tpu.vector_store %arg6[%c0_9, %c0_10, %c0_11], %26 {strides = array<i32>} : memref<1x4x128xf32, #tpu.memory_space<vmem>>, vector<1x4x128xf32>,
    return
  }
  func.func @transform_0(%arg0: i32) -> (i32, i32) {
    %c0_i32 = arith.constant 0 : i32
    %c0_i32_0 = arith.constant 0 : i32
    return %arg0, %c0_i32 : i32, i32
  }
  func.func @transform_1(%arg0: i32) -> (i32, i32) {
    %c0_i32 = arith.constant 0 : i32
    %c0_i32_0 = arith.constant 0 : i32
    %c0_i32_1 = arith.constant 0 : i32
    return %c0_i32, %c0_i32_0 : i32, i32
  }
  func.func @transform_2(%arg0: i32) -> i32 {
    %c0_i32 = arith.constant 0 : i32
    %c0_i32_0 = arith.constant 0 : i32
    return %c0_i32 : i32
  }
  func.func @transform_3(%arg0: i32) -> i32 {
    %c0_i32 = arith.constant 0 : i32
    %c0_i32_0 = arith.constant 0 : i32
    return %c0_i32 : i32
  }
  func.func @transform_4(%arg0: i32) -> i32 {
    %c0_i32 = arith.constant 0 : i32
    %c0_i32_0 = arith.constant 0 : i32
    return %c0_i32 : i32
  }
  func.func @transform_5(%arg0: i32) -> (i32, i32, i32) {
    %c0_i32 = arith.constant 0 : i32
    %c0_i32_0 = arith.constant 0 : i32
    %c0_i32_1 = arith.constant 0 : i32
    return %arg0, %c0_i32, %c0_i32_0 : i32, i32, i32
  }
}

</mosaic_0001>

<bundles_post_ra>
// kernel: tpu_custom_call.1
= control target key start
LH: loop header
LB: loop body
LE: loop exit
PB: predicated region body
PF: predicated region fallthrough
CT: control target
= control target key end

     0   :  { %11 = vsyncpa [#allocation5], 0  ;;  %s637_s0 = inlined_call_operand.vmem [shape: f32[128,128], index: 0, kind: input, shape index: {}]   ;;  %s638_s1 = inlined_call_operand.vmem [shape: f32[128,8], index: 1, kind: input, shape index: {}]   ;;  %s639_s2 = inlined_call_operand.vmem [shape: f32[2], index: 2, kind: input, shape index: {}]   ;;  %s640_s3 = inlined_call_operand.vmem [shape: f32[2], index: 3, kind: input, shape index: {}]   ;;  %s641_s4 = inlined_call_operand.<no memory space> [shape: f32[1], index: 4, kind: input, shape index: {}]   ;;  %s642_s5 = inlined_call_operand.hbm [shape: f32[1,4,128], index: 5, kind: output, shape index: {}]  }
   0x1   :  { %12 = vsyncpa [#allocation7], 0 }
   0x2   :  { %13 = vsyncpa [#allocation4], 0  ;;  %s24_s20 = sshll.u32 %s639_s2, 4  ;;  %s34_s23 = sshll.u32 %s640_s3, 4  ;;  %s25_s20 = int_to_ptr.vmem [resolvable:$true] %s24_s20  ;;  %s35_s23 = int_to_ptr.vmem [resolvable:$true] %s34_s23 }
   0x3   :  { %s435_s24 = scalar_lea.vmem %s25_s20, 16  ;;  %p440_p1 = scmp.lt.s32.totalorder %s25_s20, %s25_s20 }
   0x4   :  { %p436_p0 = scmp.ne.s32.totalorder %s25_s20, %s435_s24  ;;  %p441_p2 = scmp.lt.s32.totalorder %s435_s24, %s435_s24 }
   0x6   :  { %p442_p3 = por %p441_p2, %p440_p1 }
   0x8   :  { %p443_p4 = pnand %p442_p3, %p436_p0 }
   0xa   :  { %446 = shalt.err (!%p443_p4)
}
   0xb   :  { %s487_s25 = smov [#allocation3]   ;;  %s447_s26 = scalar_lea.vmem %s35_s23, 16 }
   0xc   :  { %27 = dma.vmem_to_smem %s25_s20, 16, %s487_s25, [#allocation5]  }
   0xd   :  { %p448_p5 = scmp.ne.s32.totalorder %s35_s23, %s447_s26  ;;  %p452_p6 = scmp.lt.s32.totalorder %s35_s23, %s35_s23 }
   0xe   :  { %p453_p7 = scmp.lt.s32.totalorder %s447_s26, %s447_s26 }
  0x10   :  { %p454_p8 = por %p453_p7, %p452_p6 }
  0x12   :  { %p455_p9 = pnand %p454_p8, %p448_p5 }
  0x14   :  { %458 = shalt.err (!%p455_p9)
}
  0x15   :  { %s488_s2 = smov [#allocation6]  }
  0x16   :  { %37 = dma.vmem_to_smem %s35_s23, 16, %s488_s2, [#allocation7]  }
  0x17   :  { %481 = dma.done.wait [#allocation5], 16  }
  0x18   :  { %482 = vsyncadd [#allocation5], 4294967280 }
  0x19   :  { %483 = dma.done.wait [#allocation7], 16  }
  0x1a   :  { %484 = vsyncadd [#allocation7], 4294967280 }
  0x1b   :  { %46 = sfence }
  0x1c   :  { %v63_v0 = vld [vmem:[%s638_s1] sm:$0xff]  ;;  %v64_v1 = vld [vmem:[%s638_s1 + $0x8] sm:$0xff]  ;;  %v65_v2 = vld [vmem:[%s638_s1 + $0x10] sm:$0xff]  ;;  %s294_s10 = sld [smem:[#allocation3 + $0x1]]  ;;  %s264_s12 = sld [smem:[#allocation6]] }
  0x1d   :  { %v384_v3 = vpack.c.bf16 %v64_v1, %v63_v0  ;;  %v66_v4 = vld [vmem:[%s638_s1 + $0x18] sm:$0xff]  ;;  %v67_v6 = vld [vmem:[%s638_s1 + $0x20] sm:$0xff]  ;;  %v68_v7 = vld [vmem:[%s638_s1 + $0x28] sm:$0xff]  ;;  %s295_s11 = sld [smem:[#allocation6 + $0x1]]  ;;  %s489_s14 = smov [#allocation8]  }
  0x1e   :  { %v388_v5 = vpack.c.bf16 %v66_v4, %v65_v2  ;;  %v392_v8 = vpack.c.bf16 %v68_v7, %v67_v6  ;;  %v47_v9 = vld [vmem:[%s637_s0] sm:$0xff]  ;;  %v69_v10 = vld [vmem:[%s638_s1 + $0x30] sm:$0xff]  ;;  %v70_v11 = vld [vmem:[%s638_s1 + $0x38] sm:$0xff]  ;;  %v275_v4 = vstv %s641_s4  ;;  %s284_s15 = sshll.u32 %s489_s14, 4  ;;  %s285_s15 = int_to_ptr.vmem [resolvable:$true] %s284_s15 }
  0x1f   :  { %385 = vmatprep.subr.bf16.mxu0 %v384_v3  ;;  %416 = vmatprep.subr.bf16.mxu1 %v384_v3  ;;  %v55_v12 = vld [vmem:[%s637_s0 + $0x40] sm:$0xff]  ;;  %v396_v13 = vpack.c.bf16 %v70_v11, %v69_v10  ;;  %v72_v15 = vld [vmem:[%s638_s1 + $0x48] sm:$0xff]  ;;  %v73_v17 = vld [vmem:[%s638_s1 + $0x50] sm:$0xff]  ;;  %s459_s16 = scalar_lea.vmem %s285_s15, 64  ;;  %p464_p11 = scmp.lt.s32.totalorder %s285_s15, %s285_s15 }
  0x20   :  { %387 = vmatpush3.bf16.msra.mxu0 %v384_v3  ;;  %424 = vmatpush3.bf16.msra.mxu1 %v384_v3  ;;  %v71_v14 = vld [vmem:[%s638_s1 + $0x40] sm:$0xff]  ;;  %v74_v18 = vld [vmem:[%s638_s1 + $0x58] sm:$0xff]  ;;  %v76_v21 = vld [vmem:[%s638_s1 + $0x68] sm:$0xff]  ;;  %p460_p10 = scmp.ne.s32.totalorder %s285_s15, %s459_s16  ;;  %p465_p12 = scmp.lt.s32.totalorder %s459_s16, %s459_s16 }
  0x21   :  { %389 = vmatprep.subr.bf16.mxu0 %v388_v5  ;;  %417 = vmatprep.subr.bf16.mxu1 %v388_v5  ;;  %v400_v16 = vpack.c.bf16 %v72_v15, %v71_v14  ;;  %v404_v19 = vpack.c.bf16 %v74_v18, %v73_v17  ;;  %v75_v20 = vld [vmem:[%s638_s1 + $0x60] sm:$0xff]  ;;  %v77_v23 = vld [vmem:[%s638_s1 + $0x70] sm:$0xff]  ;;  %v78_v24 = vld [vmem:[%s638_s1 + $0x78] sm:$0xff] }
  0x22   :  { %360 = vmatprep.mubr.f32.mxu0 %v47_v9  ;;  %372 = vmatprep.mubr.f32.mxu1 %v55_v12  ;;  %v408_v22 = vpack.c.bf16 %v76_v21, %v75_v20  ;;  %v412_v25 = vpack.c.bf16 %v78_v24, %v77_v23  ;;  %v48_v26 = vld [vmem:[%s637_s0 + $0x8] sm:$0xff]  ;;  %v49_v28 = vld [vmem:[%s637_s0 + $0x10] sm:$0xff]  ;;  %v50_v30 = vld [vmem:[%s637_s0 + $0x18] sm:$0xff]  ;;  %v261_v57 = vstv %s294_s10  ;;  %p466_p13 = por %p465_p12, %p464_p11 }
  0x23   :  { %v56_v27 = vld [vmem:[%s637_s0 + $0x48] sm:$0xff]  ;;  %v57_v29 = vld [vmem:[%s637_s0 + $0x50] sm:$0xff]  ;;  %v58_v31 = vld [vmem:[%s637_s0 + $0x58] sm:$0xff]  ;;  %v268_v61 = vstv %s295_s11 }
  0x24   :  { %391 = vmatpush3.bf16.msra.mxu0 %v388_v5  ;;  %425 = vmatpush3.bf16.msra.mxu1 %v388_v5  ;;  %v51_v32 = vld [vmem:[%s637_s0 + $0x20] sm:$0xff]  ;;  %v52_v34 = vld [vmem:[%s637_s0 + $0x28] sm:$0xff]  ;;  %v53_v36 = vld [vmem:[%s637_s0 + $0x30] sm:$0xff]  ;;  %v265_v0 = vstv %s264_s12  ;;  %p467_p0 = pnand %p466_p13, %p460_p10 }
  0x25   :  { %393 = vmatprep.subr.bf16.mxu0 %v392_v8  ;;  %418 = vmatprep.subr.bf16.mxu1 %v392_v8  ;;  %v59_v33 = vld [vmem:[%s637_s0 + $0x60] sm:$0xff]  ;;  %v60_v35 = vld [vmem:[%s637_s0 + $0x68] sm:$0xff]  ;;  %v61_v37 = vld [vmem:[%s637_s0 + $0x70] sm:$0xff] }
  0x26   :  { %v54_v38 = vld [vmem:[%s637_s0 + $0x38] sm:$0xff] }
  0x27   :  { %v62_v39 = vld [vmem:[%s637_s0 + $0x78] sm:$0xff]  ;;  %s256_s0 = sld [smem:[#allocation3]] }
  0x28   :  { %395 = vmatpush3.bf16.msra.mxu0 %v392_v8  ;;  %426 = vmatpush3.bf16.msra.mxu1 %v392_v8 }
  0x29   :  { %397 = vmatprep.subr.bf16.mxu0 %v396_v13  ;;  %419 = vmatprep.subr.bf16.mxu1 %v396_v13 }
  0x2c   :  { %399 = vmatpush3.bf16.msra.mxu0 %v396_v13  ;;  %427 = vmatpush3.bf16.msra.mxu1 %v396_v13 }
  0x2d   :  { %401 = vmatprep.subr.bf16.mxu0 %v400_v16  ;;  %420 = vmatprep.subr.bf16.mxu1 %v400_v16  ;;  %v257_v56 = vstv %s256_s0 }
  0x30   :  { %403 = vmatpush3.bf16.msra.mxu0 %v400_v16  ;;  %428 = vmatpush3.bf16.msra.mxu1 %v400_v16 }
  0x31   :  { %405 = vmatprep.subr.bf16.mxu0 %v404_v19  ;;  %421 = vmatprep.subr.bf16.mxu1 %v404_v19 }
  0x34   :  { %407 = vmatpush3.bf16.msra.mxu0 %v404_v19  ;;  %429 = vmatpush3.bf16.msra.mxu1 %v404_v19 }
  0x35   :  { %409 = vmatprep.subr.bf16.mxu0 %v408_v22  ;;  %422 = vmatprep.subr.bf16.mxu1 %v408_v22 }
  0x38   :  { %411 = vmatpush3.bf16.msra.mxu0 %v408_v22  ;;  %430 = vmatpush3.bf16.msra.mxu1 %v408_v22 }
  0x39   :  { %413 = vmatprep.subr.bf16.mxu0 %v412_v25  ;;  %423 = vmatprep.subr.bf16.mxu1 %v412_v25 }
  0x3c   :  { %415 = vmatpush3.bf16.msra.mxu0 %v412_v25  ;;  %431 = vmatpush3.bf16.msra.mxu1 %v412_v25 }
  0x3f   :  { %361 = vmatmul.mubr.f32.vlgmr.msra.gmra.mrb[0].mxu0 %v48_v26  ;;  %373 = vmatmul.mubr.f32.vlgmr.msra.gmra.mrb[0].mxu1 %v56_v27 }
  0x40   :  { %363 = vmatprep.mubr.f32.mxu0 %v49_v28  ;;  %375 = vmatprep.mubr.f32.mxu1 %v57_v29 }
  0x43   :  { %364 = vmatmul.mubr.f32.gmra.mrb[2].mxu0 %v50_v30  ;;  %376 = vmatmul.mubr.f32.gmra.mrb[2].mxu1 %v58_v31 }
  0x44   :  { %366 = vmatprep.mubr.f32.mxu0 %v51_v32  ;;  %378 = vmatprep.mubr.f32.mxu1 %v59_v33 }
  0x47   :  { %367 = vmatmul.mubr.f32.gmra.mrb[4].mxu0 %v52_v34  ;;  %379 = vmatmul.mubr.f32.gmra.mrb[4].mxu1 %v60_v35 }
  0x48   :  { %369 = vmatprep.mubr.f32.mxu0 %v53_v36  ;;  %381 = vmatprep.mubr.f32.mxu1 %v61_v37 }
  0x4b   :  { %370 = vmatmul.mubr.f32.gmra.mrb[6].mxu0 %v54_v38  ;;  %382 = vmatmul.mubr.f32.gmra.mrb[6].mxu1 %v62_v39 }
 0x112   :  { %v362_v40 = vpop.f32.mrb[0].mxu0  ;;  %v374_v41 = vpop.f32.mrb[0].mxu1 }
 0x113   :  { %v145_v42 = vpop.f32.mrb[1].mxu0  ;;  %v185_v43 = vpop.f32.mrb[1].mxu1 }
 0x114   :  { %224 = vxpose.xlu0.b32.start [1/16] (narrow) %v145_v42, 8 }
 0x116   :  { %v365_v44 = vpop.f32.mrb[2].mxu0  ;;  %v377_v45 = vpop.f32.mrb[2].mxu1 }
 0x117   :  { %v155_v46 = vpop.f32.mrb[3].mxu0  ;;  %v195_v47 = vpop.f32.mrb[3].mxu1 }
 0x118   :  { %225 = vxpose.xlu0.b32.cont [2/16] (narrow) %v362_v40, 8 }
 0x11a   :  { %v368_v48 = vpop.f32.mrb[4].mxu0  ;;  %v380_v49 = vpop.f32.mrb[4].mxu1 }
 0x11b   :  { %v165_v50 = vpop.f32.mrb[5].mxu0  ;;  %v205_v51 = vpop.f32.mrb[5].mxu1 }
 0x11c   :  { %226 = vxpose.xlu0.b32.cont [3/16] (narrow) %v155_v46, 8 }
 0x11e   :  { %v371_v52 = vpop.f32.mrb[6].mxu0  ;;  %v383_v53 = vpop.f32.mrb[6].mxu1 }
 0x11f   :  { %v175_v54 = vpop.f32.mrb[7].mxu0  ;;  %v215_v55 = vpop.f32.mrb[7].mxu1 }
 0x120   :  { %227 = vxpose.xlu0.b32.cont [4/16] (narrow) %v365_v44, 8 }
 0x124   :  { %228 = vxpose.xlu0.b32.cont [5/16] (narrow) %v165_v50, 8 }
 0x128   :  { %229 = vxpose.xlu0.b32.cont [6/16] (narrow) %v368_v48, 8 }
 0x12c   :  { %230 = vxpose.xlu0.b32.cont [7/16] (narrow) %v175_v54, 8 }
 0x130   :  { %231 = vxpose.xlu0.b32.cont [8/16] (narrow) %v371_v52, 8 }
 0x134   :  { %232 = vxpose.xlu0.b32.cont [9/16] (narrow) %v185_v43, 8 }
 0x138   :  { %233 = vxpose.xlu0.b32.cont [10/16] (narrow) %v374_v41, 8 }
 0x13c   :  { %234 = vxpose.xlu0.b32.cont [11/16] (narrow) %v195_v47, 8 }
 0x140   :  { %235 = vxpose.xlu0.b32.cont [12/16] (narrow) %v377_v45, 8 }
 0x144   :  { %236 = vxpose.xlu0.b32.cont [13/16] (narrow) %v205_v51, 8 }
 0x148   :  { %237 = vxpose.xlu0.b32.cont [14/16] (narrow) %v380_v49, 8 }
 0x14c   :  { %238 = vxpose.xlu0.b32.cont [15/16] (narrow) %v215_v55, 8 }
 0x150   :  { %239 = vxpose.xlu0.b32.end [16/16] (narrow) %v383_v53, 8 }
 0x194   :  { %v240_v58 = vpop.trf.xlu0 }
 0x195   :  { %v258_v59 = vadd.f32 %v257_v56, %v240_v58  ;;  %v262_v60 = vadd.f32 %v261_v57, %v240_v58 }
 0x197   :  { %v259_v62 = vmax.f32 %v258_v59, 0.0  ;;  %v263_v63 = vmax.f32 %v262_v60, 0.0 }
 0x199   :  { %v269_v1 = vmul.f32 %v268_v61, %v263_v63  ;;  %v266_v2 = vmul.f32 %v265_v0, %v259_v62 }
 0x19b   :  { %v271_v3 = vrot.slane %v269_v1, 4 }
 0x19d   :  { %v273_v5 = vadd.f32 %v271_v3, %v266_v2 }
 0x19f   :  { %v276_v6 = vadd.f32 %v275_v4, %v273_v5 }
 0x1a1   :  { %277 = vst [vmem:[#allocation8] sm:$0xf] %v276_v6 }
 0x1a2   :  { %470 = shalt.err (!%p467_p0)
}
 0x1a3   :  { %s471_s19 = scalar_lea.hbm %s642_s5, 64 }
 0x1a4   :  { %p472_p1 = scmp.ne.s32.totalorder %s642_s5, %s471_s19  ;;  %p475_p2 = scmp.lt.u32.totalorder %s471_s19, %s642_s5 }
 0x1a6   :  { %p477_p3 = pnand %p475_p2, %p472_p1 }
 0x1a8   :  { %480 = shalt.err (!%p477_p3)
}
 0x1a9   :  { %287 = dma.vmem_to_hbm [thread:$0]  %s285_s15, 64, %s642_s5, [#allocation4]  }
 0x1aa   :  { %485 = dma.done.wait [#allocation4], 64  }
 0x1ab   :  { %486 = vsyncadd [#allocation4], 4294967232 }
 0x1ac   :  { %291 = vsyncpa [#allocation4], 1 }
 0x1ad   :  { %292 = vsyncpa [#allocation5], 1 }
 0x1ae   :  { %293 = vsyncpa [#allocation7], 1 }

</bundles_post_ra>
